<compile_context>
chip_gen: v7x
topology: tpu7x:2x2x1
jax: 0.10.0
libtpu: 0.0.40
codegen_flags: <defaults>
</compile_context>

<pallas_src>
import functools

import jax
import jax.numpy as jnp
from jax import lax
from jax.experimental import pallas as pl
from jax.experimental.pallas import tpu as pltpu


def _round_up(x, m):
    return ((x + m - 1) // m) * m


def _pick_batch_block(n):
    """Largest divisor of n that is <=4 while keeping >=2 grid steps."""
    best = 1
    for b in range(1, min(4, n) + 1):
        if n % b == 0 and n // b >= 2:
            best = b
    return best


def _build_tap_masks(H, W, k):
    """(k*k, H*W) f32 table: 1 where the (dy,dx) tap falls inside the image.

    Handles both the lanes wrapped by the roll and the horizontal/vertical
    'same' zero padding, so the kernel does a single multiply per tap.
    """
    pad = k // 2
    HW = H * W
    idx = jnp.arange(HW, dtype=jnp.int32)
    r = idx // W
    c = idx % W
    rows = []
    for dy in range(k):
        for dx in range(k):
            oy, ox = dy - pad, dx - pad
            valid = ((r + oy >= 0) & (r + oy < H) &
                     (c + ox >= 0) & (c + ox < W))
            rows.append(valid.astype(jnp.float32))
    return jnp.stack(rows, axis=0)                       # (k*k, HW)


def _im2col_rolled(a, mask_ref, H, W, k):
    """(k*k*C, H*W) im2col matrix for a 'same' kxk conv from (C, H*W) input.

    Each spatial tap = one XLU lane rotation (pltpu.roll) of the flattened
    activation times its precomputed boundary mask.
    """
    C, HW = a.shape
    pad = k // 2
    pieces = []
    for dy in range(k):
        for dx in range(k):
            oy, ox = dy - pad, dx - pad
            s = oy * W + ox                              # flattened shift
            if oy == 0 and ox == 0:
                pieces.append(a)                         # center tap: as-is
                continue
            shifted = pltpu.roll(a, shift=(-s) % HW, axis=1)
            m = mask_ref[pl.ds(dy * k + dx, 1), :]       # (1, HW)
            pieces.append(shifted * m)
    return jnp.concatenate(pieces, axis=0)


def _resblock_kernel(x_ref, mask_ref, w1_ref, b1_ref, w2_ref, b2_ref, o_ref,
                     *, H, W, k, has_adapt, bblk, mm_dtype):
    for b in range(bblk):                                # static unroll
        x = x_ref[b].astype(jnp.float32)                 # (Cin_p, HW)

        # relu1 -> conv1 -> (+bias) -> relu2 : one MXU matmul
        cols1 = _im2col_rolled(jnp.maximum(x, 0.0), mask_ref, H, W, k)
        h = jnp.dot(w1_ref[...], cols1.astype(mm_dtype),
                    preferred_element_type=jnp.float32)
        h = jnp.maximum(h + b1_ref[...], 0.0)            # (Cout_p, HW)

        # conv2 (+ fused 1x1 adapt conv on the ORIGINAL x): one MXU matmul
        cols2 = _im2col_rolled(h, mask_ref, H, W, k)
        if has_adapt:
            cols2 = jnp.concatenate([cols2, x], axis=0)  # extra K rows
        y = jnp.dot(w2_ref[...], cols2.astype(mm_dtype),
                    preferred_element_type=jnp.float32)
        y = y + b2_ref[...]

        if not has_adapt:
            y = y + x                                    # identity residual

        o_ref[b] = y.astype(o_ref.dtype)


def resblock_forward(x_nchw, params, *, use_bf16_matmul=False):
    """ResBlock.forward; input/output NCHW like the PyTorch module."""
    N, Cin, H, W = x_nchw.shape
    w1, b1 = params["w1"], params["b1"]
    w2, b2 = params["w2"], params["b2"]
    wa, ba = params["wa"], params["ba"]
    Cout, _, k, _ = w1.shape
    HW = H * W
    kk = k * k
    has_adapt = wa is not None

    # Channel padding to sublane-tile multiples of 8.
    Cin_p = _round_up(Cin, 8)
    Cout_p = _round_up(Cout, 8)
    mm_dtype = jnp.bfloat16 if use_bf16_matmul else jnp.float32

    def pad_oihw(w, co_p, ci_p):
        co, ci = w.shape[0], w.shape[1]
        return jnp.pad(w, ((0, co_p - co), (0, ci_p - ci), (0, 0), (0, 0)))

    # Flatten conv weights into the MXU contraction layout:
    #   w_flat[co, (dy*k + dx)*C + ci] = w[co, ci, dy, dx]
    w1f = jnp.transpose(pad_oihw(w1, Cout_p, Cin_p),
                        (0, 2, 3, 1)).reshape(Cout_p, kk * Cin_p)
    w2f = jnp.transpose(pad_oihw(w2, Cout_p, Cout_p),
                        (0, 2, 3, 1)).reshape(Cout_p, kk * Cout_p)
    b1c = jnp.pad(b1, (0, Cout_p - Cout)).reshape(Cout_p, 1)
    b2v = jnp.pad(b2, (0, Cout_p - Cout))

    if has_adapt:
        # Fuse the 1x1 adapt conv into conv2: extra contraction cols + bias.
        waf = pad_oihw(wa, Cout_p, Cin_p).reshape(Cout_p, Cin_p)
        w2f = jnp.concatenate([w2f, waf], axis=1)   # (Cout_p, kk*Cout_p+Cin_p)
        b2v = b2v + jnp.pad(ba, (0, Cout_p - Cout))
    b2c = b2v.reshape(Cout_p, 1)
    Kc2 = w2f.shape[1]

    w1f = w1f.astype(mm_dtype)
    w2f = w2f.astype(mm_dtype)

    # NCHW is natively (N, C, H*W): free reshape, lane axis = H*W.
    x_flat = x_nchw.reshape(N, Cin, HW)
    if Cin_p != Cin:
        x_flat = jnp.pad(x_flat, ((0, 0), (0, Cin_p - Cin), (0, 0)))

    masks = _build_tap_masks(H, W, k)               # (kk, HW) f32, tiny

    bblk = _pick_batch_block(N)
    kernel = functools.partial(
        _resblock_kernel, H=H, W=W, k=k, has_adapt=has_adapt, bblk=bblk,
        mm_dtype=mm_dtype)

    out = pl.pallas_call(
        kernel,
        out_shape=jax.ShapeDtypeStruct((N, Cout_p, HW), jnp.float32),
        grid=(N // bblk,),
        in_specs=[
            pl.BlockSpec((bblk, Cin_p, HW), lambda n: (n, 0, 0)),
            pl.BlockSpec((kk, HW), lambda n: (0, 0)),
            pl.BlockSpec((Cout_p, kk * Cin_p), lambda n: (0, 0)),
            pl.BlockSpec((Cout_p, 1), lambda n: (0, 0)),
            pl.BlockSpec((Cout_p, Kc2), lambda n: (0, 0)),
            pl.BlockSpec((Cout_p, 1), lambda n: (0, 0)),
        ],
        out_specs=pl.BlockSpec((bblk, Cout_p, HW), lambda n: (n, 0, 0)),
        # Default scoped VMEM (16/32 MiB) is ample at these shapes; set
        # vmem_limit_bytes per-generation when scaling H*W tiles up.
        compiler_params=pltpu.CompilerParams(
            dimension_semantics=("parallel",)),
    )(x_flat, masks, w1f, b1c, w2f, b2c)

    return out[:, :Cout, :].reshape(N, Cout_p, H, W)[:, :Cout] \
        if False else out[:, :Cout, :].reshape(N, Cout, H, W)


def init_resblock_params(key, cin, cout, k):
    """Deterministic synthetic parameters in PyTorch layouts (OIHW + bias)."""
    ks = jax.random.split(key, 6)
    w1 = jax.random.normal(ks[0], (cout, cin, k, k), jnp.float32) * 0.1
    b1 = jax.random.normal(ks[1], (cout,), jnp.float32) * 0.1
    w2 = jax.random.normal(ks[2], (cout, cout, k, k), jnp.float32) * 0.1
    b2 = jax.random.normal(ks[3], (cout,), jnp.float32) * 0.1
    if cin != cout:
        wa = jax.random.normal(ks[4], (cout, cin, 1, 1), jnp.float32) * 0.1
        ba = jax.random.normal(ks[5], (cout,), jnp.float32) * 0.1
    else:
        wa = None
        ba = None
    return dict(w1=w1, b1=b1, w2=w2, b2=b2, wa=wa, ba=ba)


def _reference_forward(x, params):
    """Pure-JAX reference (lax conv) for correctness checking."""
    dn = ("NCHW", "OIHW", "NCHW")
    hp = lax.Precision.HIGHEST
    x1 = jnp.maximum(x, 0.0)
    h = lax.conv_general_dilated(
        x1, params["w1"], (1, 1), "SAME", dimension_numbers=dn, precision=hp)
    h = jnp.maximum(h + params["b1"][None, :, None, None], 0.0)
    y = lax.conv_general_dilated(
        h, params["w2"], (1, 1), "SAME", dimension_numbers=dn, precision=hp)
    y = y + params["b2"][None, :, None, None]
    if params["wa"] is not None:
        r = lax.conv_general_dilated(
            x, params["wa"], (1, 1), "SAME", dimension_numbers=dn, precision=hp)
        r = r + params["ba"][None, :, None, None]
    else:
        r = x
    return y + r


if __name__ == "__main__":
    key = jax.random.PRNGKey(0)
    k_x, k_p1, k_p2 = jax.random.split(key, 3)

    # Case 1: inputchannel != outputchannel -> fused 1x1 adapt-conv residual.
    x1 = jax.random.normal(k_x, (2, 4, 16, 16), jnp.float32)      # NCHW
    p1 = init_resblock_params(k_p1, cin=4, cout=8, k=3)
    out1 = jax.block_until_ready(resblock_forward(x1, p1))
    ref1 = jax.block_until_ready(_reference_forward(x1, p1))
    assert out1.shape == (2, 8, 16, 16), out1.shape
    assert jnp.allclose(out1, ref1, atol=1e-4, rtol=1e-4), "mismatch (adapt path)"

    # Case 2: inputchannel == outputchannel -> identity residual path.
    x2 = jax.random.normal(k_x, (2, 8, 16, 16), jnp.float32)      # NCHW
    p2 = init_resblock_params(k_p2, cin=8, cout=8, k=3)
    out2 = jax.block_until_ready(resblock_forward(x2, p2))
    ref2 = jax.block_until_ready(_reference_forward(x2, p2))
    assert out2.shape == (2, 8, 16, 16), out2.shape
    assert jnp.allclose(out2, ref2, atol=1e-4, rtol=1e-4), "mismatch (identity path)"

    print("KERNEL_OK")
</pallas_src>

<mosaic_0001>
module attributes {stable_mosaic.version = 11 : i64} {
  func.func @_resblock_kernel(%arg0: i32, %arg1: memref<1x8x256xf32, #tpu.memory_space<vmem>>, %arg2: memref<9x256xf32, #tpu.memory_space<vmem>>, %arg3: memref<8x72xf32, #tpu.memory_space<vmem>>, %arg4: memref<8x1xf32, #tpu.memory_space<vmem>>, %arg5: memref<8x80xf32, #tpu.memory_space<vmem>>, %arg6: memref<8x1xf32, #tpu.memory_space<vmem>>, %arg7: memref<1x8x256xf32, #tpu.memory_space<vmem>>) attributes {dimension_semantics = [#tpu.dimension_semantics<parallel>], iteration_bounds = array<i64: 2>, scalar_prefetch = 0 : i64, scratch_operands = 0 : i64, tpu.core_type = #tpu.core_type<tc>, window_params = [{transform_indices = @transform_0, window_bounds = array<i64: 1, 8, 256>}, {pipeline_mode = #tpu.pipeline_mode<synchronous>, transform_indices = @transform_1, window_bounds = array<i64: 9, 256>}, {pipeline_mode = #tpu.pipeline_mode<synchronous>, transform_indices = @transform_2, window_bounds = array<i64: 8, 72>}, {pipeline_mode = #tpu.pipeline_mode<synchronous>, transform_indices = @transform_3, window_bounds = array<i64: 8, 1>}, {pipeline_mode = #tpu.pipeline_mode<synchronous>, transform_indices = @transform_4, window_bounds = array<i64: 8, 80>}, {pipeline_mode = #tpu.pipeline_mode<synchronous>, transform_indices = @transform_5, window_bounds = array<i64: 8, 1>}, {transform_indices = @transform_6, window_bounds = array<i64: 1, 8, 256>}]} {
    %c0 = arith.constant 0 : index
    %c0_0 = arith.constant 0 : index
    %c0_1 = arith.constant 0 : index
    %0 = vector.load %arg1[%c0, %c0_0, %c0_1] : memref<1x8x256xf32, #tpu.memory_space<vmem>>, vector<1x8x256xf32>
    %1 = vector.shape_cast %0 : vector<1x8x256xf32> to vector<8x256xf32>
    %cst = arith.constant 0.000000e+00 : f32
    %2 = vector.broadcast %cst : f32 to vector<8x256xf32>
    %3 = arith.maximumf %1, %2 : vector<8x256xf32>
    %c17_i32 = arith.constant 17 : i32
    %4 = tpu.dynamic_rotate %3 by %c17_i32 dim 1 : vector<8x256xf32>, i32 -> vector<8x256xf32>
    %c0_2 = arith.constant 0 : index
    %c0_3 = arith.constant 0 : index
    %5 = vector.load %arg2[%c0_2, %c0_3] : memref<9x256xf32, #tpu.memory_space<vmem>>, vector<1x256xf32>
    %6 = vector.broadcast %5 : vector<1x256xf32> to vector<8x256xf32>
    %7 = arith.mulf %4, %6 : vector<8x256xf32>
    %c16_i32 = arith.constant 16 : i32
    %8 = tpu.dynamic_rotate %3 by %c16_i32 dim 1 : vector<8x256xf32>, i32 -> vector<8x256xf32>
    %c1 = arith.constant 1 : index
    %c0_4 = arith.constant 0 : index
    %9 = vector.load %arg2[%c1, %c0_4] : memref<9x256xf32, #tpu.memory_space<vmem>>, vector<1x256xf32>
    %10 = vector.broadcast %9 : vector<1x256xf32> to vector<8x256xf32>
    %11 = arith.mulf %8, %10 : vector<8x256xf32>
    %c15_i32 = arith.constant 15 : i32
    %12 = tpu.dynamic_rotate %3 by %c15_i32 dim 1 : vector<8x256xf32>, i32 -> vector<8x256xf32>
    %c2 = arith.constant 2 : index
    %c0_5 = arith.constant 0 : index
    %13 = vector.load %arg2[%c2, %c0_5] : memref<9x256xf32, #tpu.memory_space<vmem>>, vector<1x256xf32>
    %14 = vector.broadcast %13 : vector<1x256xf32> to vector<8x256xf32>
    %15 = arith.mulf %12, %14 : vector<8x256xf32>
    %c1_i32 = arith.constant 1 : i32
    %16 = tpu.dynamic_rotate %3 by %c1_i32 dim 1 : vector<8x256xf32>, i32 -> vector<8x256xf32>
    %c3 = arith.constant 3 : index
    %c0_6 = arith.constant 0 : index
    %17 = vector.load %arg2[%c3, %c0_6] : memref<9x256xf32, #tpu.memory_space<vmem>>, vector<1x256xf32>
    %18 = vector.broadcast %17 : vector<1x256xf32> to vector<8x256xf32>
    %19 = arith.mulf %16, %18 : vector<8x256xf32>
    %c255_i32 = arith.constant 255 : i32
    %20 = tpu.dynamic_rotate %3 by %c255_i32 dim 1 : vector<8x256xf32>, i32 -> vector<8x256xf32>
    %c5 = arith.constant 5 : index
    %c0_7 = arith.constant 0 : index
    %21 = vector.load %arg2[%c5, %c0_7] : memref<9x256xf32, #tpu.memory_space<vmem>>, vector<1x256xf32>
    %22 = vector.broadcast %21 : vector<1x256xf32> to vector<8x256xf32>
    %23 = arith.mulf %20, %22 : vector<8x256xf32>
    %c241_i32 = arith.constant 241 : i32
    %24 = tpu.dynamic_rotate %3 by %c241_i32 dim 1 : vector<8x256xf32>, i32 -> vector<8x256xf32>
    %c6 = arith.constant 6 : index
    %c0_8 = arith.constant 0 : index
    %25 = vector.load %arg2[%c6, %c0_8] : memref<9x256xf32, #tpu.memory_space<vmem>>, vector<1x256xf32>
    %26 = vector.broadcast %25 : vector<1x256xf32> to vector<8x256xf32>
    %27 = arith.mulf %24, %26 : vector<8x256xf32>
    %c240_i32 = arith.constant 240 : i32
    %28 = tpu.dynamic_rotate %3 by %c240_i32 dim 1 : vector<8x256xf32>, i32 -> vector<8x256xf32>
    %c7 = arith.constant 7 : index
    %c0_9 = arith.constant 0 : index
    %29 = vector.load %arg2[%c7, %c0_9] : memref<9x256xf32, #tpu.memory_space<vmem>>, vector<1x256xf32>
    %30 = vector.broadcast %29 : vector<1x256xf32> to vector<8x256xf32>
    %31 = arith.mulf %28, %30 : vector<8x256xf32>
    %c239_i32 = arith.constant 239 : i32
    %32 = tpu.dynamic_rotate %3 by %c239_i32 dim 1 : vector<8x256xf32>, i32 -> vector<8x256xf32>
    %c8 = arith.constant 8 : index
    %c0_10 = arith.constant 0 : index
    %33 = vector.load %arg2[%c8, %c0_10] : memref<9x256xf32, #tpu.memory_space<vmem>>, vector<1x256xf32>
    %34 = vector.broadcast %33 : vector<1x256xf32> to vector<8x256xf32>
    %35 = arith.mulf %32, %34 : vector<8x256xf32>
    %36 = tpu.concatenate %7, %11, %15, %19, %3, %23, %27, %31, %35 in 0 : vector<8x256xf32>, vector<8x256xf32>, vector<8x256xf32>, vector<8x256xf32>, vector<8x256xf32>, vector<8x256xf32>, vector<8x256xf32>, vector<8x256xf32>, vector<8x256xf32> -> vector<72x256xf32>
    %c0_11 = arith.constant 0 : index
    %c0_12 = arith.constant 0 : index
    %37 = vector.load %arg3[%c0_11, %c0_12] : memref<8x72xf32, #tpu.memory_space<vmem>>, vector<8x72xf32>
    %cst_13 = arith.constant dense<0.000000e+00> : vector<8x256xf32>
    %38 = tpu.matmul %37, %36, %cst_13 {dimension_numbers = #tpu.dot_dimension_numbers<[1], [0], [0], [1], [0, 0, 1, 1], [], []>} : vector<8x72xf32>, vector<72x256xf32>, vector<8x256xf32> -> vector<8x256xf32>
    %c0_14 = arith.constant 0 : index
    %c0_15 = arith.constant 0 : index
    %39 = vector.load %arg4[%c0_14, %c0_15] : memref<8x1xf32, #tpu.memory_space<vmem>>, vector<8x1xf32>
    %40 = vector.broadcast %39 : vector<8x1xf32> to vector<8x256xf32>
    %41 = arith.addf %38, %40 : vector<8x256xf32>
    %cst_16 = arith.constant 0.000000e+00 : f32
    %42 = vector.broadcast %cst_16 : f32 to vector<8x256xf32>
    %43 = arith.maximumf %41, %42 : vector<8x256xf32>
    %c17_i32_17 = arith.constant 17 : i32
    %44 = tpu.dynamic_rotate %43 by %c17_i32_17 dim 1 : vector<8x256xf32>, i32 -> vector<8x256xf32>
    %c0_18 = arith.constant 0 : index
    %c0_19 = arith.constant 0 : index
    %45 = vector.load %arg2[%c0_18, %c0_19] : memref<9x256xf32, #tpu.memory_space<vmem>>, vector<1x256xf32>
    %46 = vector.broadcast %45 : vector<1x256xf32> to vector<8x256xf32>
    %47 = arith.mulf %44, %46 : vector<8x256xf32>
    %c16_i32_20 = arith.constant 16 : i32
    %48 = tpu.dynamic_rotate %43 by %c16_i32_20 dim 1 : vector<8x256xf32>, i32 -> vector<8x256xf32>
    %c1_21 = arith.constant 1 : index
    %c0_22 = arith.constant 0 : index
    %49 = vector.load %arg2[%c1_21, %c0_22] : memref<9x256xf32, #tpu.memory_space<vmem>>, vector<1x256xf32>
    %50 = vector.broadcast %49 : vector<1x256xf32> to vector<8x256xf32>
    %51 = arith.mulf %48, %50 : vector<8x256xf32>
    %c15_i32_23 = arith.constant 15 : i32
    %52 = tpu.dynamic_rotate %43 by %c15_i32_23 dim 1 : vector<8x256xf32>, i32 -> vector<8x256xf32>
    %c2_24 = arith.constant 2 : index
    %c0_25 = arith.constant 0 : index
    %53 = vector.load %arg2[%c2_24, %c0_25] : memref<9x256xf32, #tpu.memory_space<vmem>>, vector<1x256xf32>
    %54 = vector.broadcast %53 : vector<1x256xf32> to vector<8x256xf32>
    %55 = arith.mulf %52, %54 : vector<8x256xf32>
    %c1_i32_26 = arith.constant 1 : i32
    %56 = tpu.dynamic_rotate %43 by %c1_i32_26 dim 1 : vector<8x256xf32>, i32 -> vector<8x256xf32>
    %c3_27 = arith.constant 3 : index
    %c0_28 = arith.constant 0 : index
    %57 = vector.load %arg2[%c3_27, %c0_28] : memref<9x256xf32, #tpu.memory_space<vmem>>, vector<1x256xf32>
    %58 = vector.broadcast %57 : vector<1x256xf32> to vector<8x256xf32>
    %59 = arith.mulf %56, %58 : vector<8x256xf32>
    %c255_i32_29 = arith.constant 255 : i32
    %60 = tpu.dynamic_rotate %43 by %c255_i32_29 dim 1 : vector<8x256xf32>, i32 -> vector<8x256xf32>
    %c5_30 = arith.constant 5 : index
    %c0_31 = arith.constant 0 : index
    %61 = vector.load %arg2[%c5_30, %c0_31] : memref<9x256xf32, #tpu.memory_space<vmem>>, vector<1x256xf32>
    %62 = vector.broadcast %61 : vector<1x256xf32> to vector<8x256xf32>
    %63 = arith.mulf %60, %62 : vector<8x256xf32>
    %c241_i32_32 = arith.constant 241 : i32
    %64 = tpu.dynamic_rotate %43 by %c241_i32_32 dim 1 : vector<8x256xf32>, i32 -> vector<8x256xf32>
    %c6_33 = arith.constant 6 : index
    %c0_34 = arith.constant 0 : index
    %65 = vector.load %arg2[%c6_33, %c0_34] : memref<9x256xf32, #tpu.memory_space<vmem>>, vector<1x256xf32>
    %66 = vector.broadcast %65 : vector<1x256xf32> to vector<8x256xf32>
    %67 = arith.mulf %64, %66 : vector<8x256xf32>
    %c240_i32_35 = arith.constant 240 : i32
    %68 = tpu.dynamic_rotate %43 by %c240_i32_35 dim 1 : vector<8x256xf32>, i32 -> vector<8x256xf32>
    %c7_36 = arith.constant 7 : index
    %c0_37 = arith.constant 0 : index
    %69 = vector.load %arg2[%c7_36, %c0_37] : memref<9x256xf32, #tpu.memory_space<vmem>>, vector<1x256xf32>
    %70 = vector.broadcast %69 : vector<1x256xf32> to vector<8x256xf32>
    %71 = arith.mulf %68, %70 : vector<8x256xf32>
    %c239_i32_38 = arith.constant 239 : i32
    %72 = tpu.dynamic_rotate %43 by %c239_i32_38 dim 1 : vector<8x256xf32>, i32 -> vector<8x256xf32>
    %c8_39 = arith.constant 8 : index
    %c0_40 = arith.constant 0 : index
    %73 = vector.load %arg2[%c8_39, %c0_40] : memref<9x256xf32, #tpu.memory_space<vmem>>, vector<1x256xf32>
    %74 = vector.broadcast %73 : vector<1x256xf32> to vector<8x256xf32>
    %75 = arith.mulf %72, %74 : vector<8x256xf32>
    %76 = tpu.concatenate %47, %51, %55, %59, %43, %63, %67, %71, %75 in 0 : vector<8x256xf32>, vector<8x256xf32>, vector<8x256xf32>, vector<8x256xf32>, vector<8x256xf32>, vector<8x256xf32>, vector<8x256xf32>, vector<8x256xf32>, vector<8x256xf32> -> vector<72x256xf32>
    %77 = tpu.concatenate %76, %1 in 0 : vector<72x256xf32>, vector<8x256xf32> -> vector<80x256xf32>
    %c0_41 = arith.constant 0 : index
    %c0_42 = arith.constant 0 : index
    %78 = vector.load %arg5[%c0_41, %c0_42] : memref<8x80xf32, #tpu.memory_space<vmem>>, vector<8x80xf32>
    %cst_43 = arith.constant dense<0.000000e+00> : vector<8x256xf32>
    %79 = tpu.matmul %78, %77, %cst_43 {dimension_numbers = #tpu.dot_dimension_numbers<[1], [0], [0], [1], [0, 0, 1, 1], [], []>} : vector<8x80xf32>, vector<80x256xf32>, vector<8x256xf32> -> vector<8x256xf32>
    %c0_44 = arith.constant 0 : index
    %c0_45 = arith.constant 0 : index
    %80 = vector.load %arg6[%c0_44, %c0_45] : memref<8x1xf32, #tpu.memory_space<vmem>>, vector<8x1xf32>
    %81 = vector.broadcast %80 : vector<8x1xf32> to vector<8x256xf32>
    %82 = arith.addf %79, %81 : vector<8x256xf32>
    %c0_46 = arith.constant 0 : index
    %c0_47 = arith.constant 0 : index
    %c0_48 = arith.constant 0 : index
    %83 = vector.load %arg7[%c0_46, %c0_47, %c0_48] : memref<1x8x256xf32, #tpu.memory_space<vmem>>, vector<1x8x256xf32>
    %84 = vector.shape_cast %83 : vector<1x8x256xf32> to vector<8x256xf32>
    %85 = vector.shape_cast %82 : vector<8x256xf32> to vector<1x8x256xf32>
    tpu.vector_store %arg7[%c0_46, %c0_47, %c0_48], %85 {strides = array<i32>} : memref<1x8x256xf32, #tpu.memory_space<vmem>>, vector<1x8x256xf32>,
    return
  }
  func.func @transform_0(%arg0: i32) -> (i32, i32, i32) {
    %c0_i32 = arith.constant 0 : i32
    %c0_i32_0 = arith.constant 0 : i32
    %c0_i32_1 = arith.constant 0 : i32
    return %arg0, %c0_i32, %c0_i32_0 : i32, i32, i32
  }
  func.func @transform_1(%arg0: i32) -> (i32, i32) {
    %c0_i32 = arith.constant 0 : i32
    %c0_i32_0 = arith.constant 0 : i32
    %c0_i32_1 = arith.constant 0 : i32
    return %c0_i32, %c0_i32_0 : i32, i32
  }
  func.func @transform_2(%arg0: i32) -> (i32, i32) {
    %c0_i32 = arith.constant 0 : i32
    %c0_i32_0 = arith.constant 0 : i32
    %c0_i32_1 = arith.constant 0 : i32
    return %c0_i32, %c0_i32_0 : i32, i32
  }
  func.func @transform_3(%arg0: i32) -> (i32, i32) {
    %c0_i32 = arith.constant 0 : i32
    %c0_i32_0 = arith.constant 0 : i32
    %c0_i32_1 = arith.constant 0 : i32
    return %c0_i32, %c0_i32_0 : i32, i32
  }
  func.func @transform_4(%arg0: i32) -> (i32, i32) {
    %c0_i32 = arith.constant 0 : i32
    %c0_i32_0 = arith.constant 0 : i32
    %c0_i32_1 = arith.constant 0 : i32
    return %c0_i32, %c0_i32_0 : i32, i32
  }
  func.func @transform_5(%arg0: i32) -> (i32, i32) {
    %c0_i32 = arith.constant 0 : i32
    %c0_i32_0 = arith.constant 0 : i32
    %c0_i32_1 = arith.constant 0 : i32
    return %c0_i32, %c0_i32_0 : i32, i32
  }
  func.func @transform_6(%arg0: i32) -> (i32, i32, i32) {
    %c0_i32 = arith.constant 0 : i32
    %c0_i32_0 = arith.constant 0 : i32
    %c0_i32_1 = arith.constant 0 : i32
    return %arg0, %c0_i32, %c0_i32_0 : i32, i32, i32
  }
}

</mosaic_0001>

<bundles_post_ra>
// kernel: tpu_custom_call.1
= control target key start
LH: loop header
LB: loop body
LE: loop exit
PB: predicated region body
PF: predicated region fallthrough
CT: control target
= control target key end

     0   :  { %11 = vsyncpa [#allocation3], 0  ;;  %s1540_s0 = inlined_call_operand.hbm [shape: f32[2,8,256], index: 0, kind: input, shape index: {}]   ;;  %s1541_s1 = inlined_call_operand.hbm [shape: f32[9,256], index: 1, kind: input, shape index: {}]   ;;  %s1542_s2 = inlined_call_operand.vmem [shape: f32[8,72], index: 2, kind: input, shape index: {}]   ;;  %s1543_s3 = inlined_call_operand.vmem [shape: f32[8,1], index: 3, kind: input, shape index: {}]   ;;  %s1544_s4 = inlined_call_operand.vmem [shape: f32[8,80], index: 4, kind: input, shape index: {}]   ;;  %s1545_s5 = inlined_call_operand.vmem [shape: f32[8,1], index: 5, kind: input, shape index: {}]   ;;  %s1546_s6 = inlined_call_operand.hbm [shape: f32[2,8,256], index: 6, kind: output, shape index: {}]  }
   0x1   :  { %13 = vsyncpa [#allocation3 + $0x1], 0 }
   0x2   :  { %14 = vsyncpa [#allocation6], 0 }
   0x3   :  { %15 = vsyncpa [#allocation4], 0 }
   0x4   :  { %17 = vsyncpa [#allocation4 + $0x1], 0  ;;  %s1097_s21 = smov 0   ;;  %s1099_s22 = smov 0  }
   0x5   :  { %s1101_s23 = smov 0   ;;  %s1103_s24 = smov 0  }
   0x6 LB: > { %s1118_s25 = sadd.s32 4294967295, %s1045_s24   ;;  %s791_s26 = sadd.s32 4294967294, %s1045_s24   ;;  %s1045_s24 = sphi %s1103_s24, %s1566_s24   ;;  %s1041_s23 = sphi %s1101_s23, %s1565_s23   ;;  %s1037_s22 = sphi %s1099_s22, %s1564_s22   ;;  %s1033_s21 = sphi %s1097_s21, %s1563_s21  }
   0x7   : > { %p43_p0 = scmp.ne.s32.totalorder %s1037_s22, %s1033_s21  ;;  %p1547_p1 = scmp.eq.s32.totalorder %s1118_s25, 0 }
   0x8   : > { %p178_p3 = scmp.eq.s32.totalorder %s791_s26, 1  ;;  %p792_p5 = scmp.ge.s32.totalorder %s1045_s24, 1 }
   0x9   : > { %p1127_p4 = por %p1547_p1, %p43_p0  ;;  %p185_p7 = scmp.lt.s32.totalorder %s1045_s24, 3 }
   0xa   : > { %p1132_p6 = por %p178_p3, %p43_p0  ;;  %s1047_s30 = smov [#allocation5]  }
   0xb   : > { %s1550_s27 = scalar_select %p1127_p4, 1, 0 }
   0xc   : > { %s1551_s28 = scalar_select %p1132_p6, 1, 0 }
   0xd   : > { %p1137_p8 = pnand %p792_p5, %p185_p7  ;;  %s197_s7 = sshll.u32 %s1047_s30, 4  ;;  %s1141_s7 = int_to_ptr.vmem [resolvable:$true] %s197_s7 }
   0xe   : > { %s1153_s9 = sadd.s32 1, %s1045_s24   ;;  %s30_s10 = sadd.s32 1, %s1041_s23 }
   0xf   : > { %s1552_s29 = scalar_select %p1137_p8, 1, 0 }
  0x10   : > { %p855_p9 = pneg %p1137_p8  ;;  %s27_s11 = ssub.s32 %s1045_s24, %s1153_s9 }
  0x11   : > { %s917_s14 = scalar_lea.hbm %s1541_s1, 512 }
  0x12   : > { %p1148_p11 = pnand %p855_p9, %p1547_p1  ;;  %p918_p12 = scmp.ne.s32.totalorder %s1541_s1, %s917_s14 }
  0x13   : > { %p924_p5 = scmp.lt.u32.totalorder %s917_s14, %s1541_s1 }
  0x14   : > { %p919_p13 = pneg %p1148_p11 }
  0x16   : > { %p920_p0 = pnand %p919_p13, %p918_p12 }
  0x18   : > { %p921_p3 = pneg %p920_p0 }
  0x1a   : > { %p926_p7 = pnand %p924_p5, %p921_p3 }
  0x1c   : > { %929 = shalt.err (!%p926_p7)
}
  0x1d   : > { %s930_s19 = scalar_lea.vmem %s1141_s7, 512  ;;  %p938_p2 = scmp.lt.s32.totalorder %s1141_s7, %s1141_s7 }
  0x1e   : > { %p931_p9 = scmp.ne.s32.totalorder %s1141_s7, %s930_s19  ;;  %p939_p6 = scmp.lt.s32.totalorder %s930_s19, %s930_s19 }
  0x20   : > { %p933_p10 = pnand %p931_p9, %p919_p13  ;;  %p940_p4 = por %p939_p6, %p938_p2 }
  0x22   : > { %p934_p1 = pneg %p933_p10 }
  0x24   : > { %p941_p8 = pnand %p940_p4, %p934_p1 }
  0x26   : > { %944 = shalt.err (!%p941_p8)
}
  0x27   : > { %s1048_s20 = smov 256   ;;  %s1049_s26 = smov 16  }
  0x28   : > { %858 = dma.hbm_to_vmem [thread:$0]  (!%p1148_p11), %s1541_s1, 512, %s1141_s7, [#allocation6], %s1048_s20, %s1048_s20, %s1049_s26  }
  0x29   : > { %p28_p2 = scmp.eq.s32.totalorder %s27_s11, 0  ;;  %p37_p1 = scmp.ne.s32.totalorder %s1041_s23, %s1037_s22 }
  0x2a   : > { %p38_p4 = scmp.eq.s32.totalorder %s1045_s24, 0  ;;  %p868_p6 = scmp.lt.s32.totalorder %s1045_s24, 2 }
  0x2b   : > { %s1184_s13 = scalar_select %p28_p2, %s1041_s23, %s30_s10  }
  0x2c   : > { %p39_p8 = por %p38_p4, %p37_p1  ;;  %p1554_p10 = scmp.eq.s32.totalorder %s1118_s25, 1 }
  0x2d   : > { %s223_s15 = sand.u32 1, %s1041_s23   ;;  %s809_s16 = sshll.u32 %s1045_s24, 8 }
  0x2e   : > { %p1188_p12 = por %p1554_p10, %p37_p1  ;;  %s795_s17 = sshll.u32 %s223_s15, 4 }
  0x2f   : > { %s1197_s19 = scalar_lea.hbm %s1540_s0, %s809_s16  ;;  %s227_s7 = scalar_lea.vmem [#allocation2], %s795_s17 }
  0x30   : > { %s235_s10 = sshll.u32 %s227_s7, 4  ;;  %p1199_p11 = pnand %p868_p6, %p39_p8  ;;  %s1203_s10 = int_to_ptr.vmem [resolvable:$true] %s235_s10 }
  0x31   : > { %s224_s20 = scalar_lea.sflag [#allocation3], %s223_s15  ;;  %s945_s26 = scalar_lea.hbm %s1197_s19, 256 }
  0x32   : > { %p946_p13 = scmp.ne.s32.totalorder %s1197_s19, %s945_s26  ;;  %p947_p0 = pneg %p1199_p11 }
  0x33   : > { %s950_s16 = scalar_lea.hbm %s1540_s0, 512  ;;  %p951_p7 = scmp.lt.u32.totalorder %s1197_s19, %s1540_s0 }
  0x34   : > { %p948_p3 = pnand %p947_p0, %p946_p13  ;;  %p952_p9 = scmp.lt.u32.totalorder %s950_s16, %s945_s26 }
  0x35   : > { %p954_p1 = scmp.lt.u32.totalorder %s945_s26, %s1197_s19 }
  0x36   : > { %p949_p5 = pneg %p948_p3  ;;  %p953_p2 = por %p952_p9, %p951_p7 }
  0x38   : > { %p955_p4 = por %p954_p1, %p953_p2 }
  0x3a   : > { %p956_p6 = pnand %p955_p4, %p949_p5 }
  0x3c   : > { %959 = shalt.err (!%p956_p6)
}
  0x3d   : > { %s960_s15 = scalar_lea.vmem %s1203_s10, 256  ;;  %s1050_s18 = smov [#allocation2]  }
  0x3e   : > { %p961_p8 = scmp.ne.s32.totalorder %s1203_s10, %s960_s15  ;;  %s965_s7 = sshll.u32 %s1050_s18, 4  ;;  %s966_s7 = int_to_ptr.vmem [resolvable:$false] %s965_s7 }
  0x3f   : > { %s967_s30 = scalar_lea.vmem %s966_s7, 512  ;;  %p968_p3 = scmp.lt.s32.totalorder %s1203_s10, %s966_s7 }
  0x40   : > { %p963_p10 = pnand %p961_p8, %p947_p0  ;;  %p969_p7 = scmp.lt.s32.totalorder %s967_s30, %s960_s15 }
  0x42   : > { %p964_p13 = pneg %p963_p10  ;;  %p970_p9 = por %p969_p7, %p968_p3 }
  0x44   : > { %p971_p2 = pnand %p970_p9, %p964_p13 }
  0x46   : > { %974 = shalt.err (!%p971_p2)
}
  0x47   : > { %862 = dma.hbm_to_vmem [thread:$0]  (!%p1199_p11), %s1197_s19, 256, %s1203_s10, %s224_s20  }
  0x48   : > { %p1557_p5 = scmp.ne.s32.totalorder %s1552_s29, 0 }
  0x49   : > { %s1233_s26 = sand.u32 (!%p1557_p5), 1, %s1037_s22   ;;  %p1558_p0 = scmp.ne.s32.totalorder (!%p1557_p5), %s1550_s27, 0 }
  0x4a   : > { %244 = sbr.rel (%p1557_p5) target bundleno = 839 (0x347), region = 44  ;;  %s799_s12 = sshll.u32 (!%p1557_p5), %s1233_s26, 4 }
  0x4b   : > { %s247_s16 = scalar_lea.sflag (!%p1557_p5), [#allocation3], %s1233_s26  ;;  %s250_s17 = scalar_lea.vmem (!%p1557_p5), [#allocation2], %s799_s12 }
  0x51   : > { %1020 = dma.done.wait (%p1558_p0), %s247_s16, 256  }
  0x52   : > { %1022 = vsyncadd (%p1558_p0), %s247_s16, 4294967040  ;;  %p1559_p11 = scmp.eq.s32.totalorder %s1118_s25, 0 }
  0x54   : > { %1024 = dma.done.wait (%p1559_p11), [#allocation6], 512   ;;  %p1560_p1 = pmov %p1559_p11 }
  0x55   : > { %v1247_v0 = vld [vmem:[%s250_s17] sm:$0xff]  ;;  %v1249_v1 = vld [vmem:[%s250_s17 + $0x8] sm:$0xff]  ;;  %s1051_s29 = smov 16   ;;  %s1052_s19 = smov 17   ;;  %v1057_v4 = vmov 0.0   ;;  %v1058_v5 = vmov 0   ;;  %v291_v7 = vlaneseq }
  0x56   : > { %1026 = vsyncadd (%p1560_p1), [#allocation6], 4294966784  ;;  %v1252_v2 = vmax.f32 %v1247_v0, 0.0  ;;  %v1259_v3 = vmax.f32 %v1249_v1, 0.0  ;;  %s1053_s27 = smov 15   ;;  %s1054_s10 = smov 1   ;;  %539 = vmatprep.mubr.f32.mxu0 %v1057_v4  ;;  %687 = vmatprep.mubr.f32.mxu1 %v1057_v4 }
  0x57   : > { %s1055_s11 = smov 127   ;;  %s1056_s20 = smov 113   ;;  %916 = vset.pattern.permute.xlu0 %v1058_v5  ;;  %v465_v6 = vld [vmem:[%s1543_s3] sm:$0xff]  ;;  %v299_v8 = vshrl.u32 %v291_v7, 7  ;;  %v1292_v9 = vand.u32 127, %v291_v7  ;;  %vm471_vm8 = vcmask 588800  }
  0x58   : > { %310 = vrot.lane.b32.xlu1 %v1252_v2, %s1051_s29  ;;  %287 = vrot.lane.b32.xlu0 %v1252_v2, %s1052_s19  ;;  %s1059_s8 = smov 112   ;;  %s1060_s15 = smov 111   ;;  %v318_v12 = vld [vmem:[#allocation5 + $0x1] ss:$8 sm:$0x3]  ;;  %vm619_vm9 = vcmask 654336  }
  0x59   : > { %v1294_v10 = vsub.s32 0, %v299_v8  ;;  %v1296_v11 = vsub.s32 1, %v299_v8  ;;  %v296_v13 = vld [vmem:[#allocation5] ss:$8 sm:$0x3]  ;;  %vm314_vm0 = vcmp.lt.s32.totalorder %v1292_v9, 16 }
  0x5a   : > { %vm293_vm1 = vcmp.lt.s32.totalorder %v1292_v9, 17  ;;  %v340_v30 = vld [vmem:[#allocation5 + $0x2] ss:$8 sm:$0x3]  ;;  %vm336_vm2 = vcmp.lt.s32.totalorder %v1292_v9, 15  ;;  %vm358_vm3 = vcmp.lt.s32.totalorder %v1292_v9, 1 }
  0x5b   : > { %v1301_v16 = vrot.slane %v318_v12, %v1294_v10  ;;  %v1304_v17 = vrot.slane %v296_v13, %v1294_v10  ;;  %v1307_v18 = vrot.slane %v296_v13, %v1296_v11  ;;  %v1310_v19 = vrot.slane %v318_v12, %v1296_v11  ;;  %v362_v31 = vld [vmem:[#allocation5 + $0x3] ss:$8 sm:$0x3]  ;;  %v384_v40 = vld [vmem:[#allocation5 + $0x5] ss:$8 sm:$0x3] }
  0x5c   : > { %312 = vrot.lane.b32.xlu1 %v1259_v3, %s1051_s29  ;;  %289 = vrot.lane.b32.xlu0 %v1259_v3, %s1052_s19  ;;  %v1327_v36 = vrot.slane %v340_v30, %v1294_v10  ;;  %v1330_v37 = vrot.slane %v340_v30, %v1296_v11  ;;  %v1333_v38 = vrot.slane %v362_v31, %v1294_v10  ;;  %vm380_vm4 = vcmp.lt.s32.totalorder %v1292_v9, 127  ;;  %v406_v61 = vld [vmem:[#allocation5 + $0x6] ss:$8 sm:$0x3]  ;;  %s1061_s7 = smov [#allocation7]  }
  0x5d   : > { %v1336_v39 = vrot.slane %v362_v31, %v1296_v11  ;;  %v1348_v47 = vrot.slane %v384_v40, %v1294_v10  ;;  %v1351_v48 = vrot.slane %v384_v40, %v1296_v11  ;;  %v428_v62 = vld [vmem:[#allocation5 + $0x7] ss:$8 sm:$0x3]  ;;  %vm402_vm5 = vcmp.lt.s32.totalorder %v1292_v9, 113  ;;  %s979_s30 = sshll.u32 %s1061_s7, 4  ;;  %s980_s30 = int_to_ptr.vmem [resolvable:$false] %s979_s30 }
  0x5e   : > { %v1367_v7 = vrot.slane %v406_v61, %v1294_v10  ;;  %v1370_v8 = vrot.slane %v406_v61, %v1296_v11  ;;  %vm424_vm6 = vcmp.lt.s32.totalorder %v1292_v9, 112  ;;  %v1374_v12 = vrot.slane %v428_v62, %v1294_v10  ;;  %s981_s16 = scalar_lea.vmem %s980_s30, 512 }
  0x5f   : > { %v1377_v13 = vrot.slane %v428_v62, %v1296_v11  ;;  %vm446_vm7 = vcmp.lt.s32.totalorder %v1292_v9, 111 }
  0x60   : > { %334 = vrot.lane.b32.xlu1 %v1259_v3, %s1053_s27  ;;  %332 = vrot.lane.b32.xlu0 %v1252_v2, %s1053_s27 }
  0x64   : > { %356 = vrot.lane.b32.xlu1 %v1259_v3, %s1054_s10  ;;  %354 = vrot.lane.b32.xlu0 %v1252_v2, %s1054_s10 }
  0x68   : > { %378 = vrot.lane.b32.xlu1 %v1259_v3, %s1055_s11  ;;  %376 = vrot.lane.b32.xlu0 %v1252_v2, %s1055_s11 }
  0x6c   : > { %400 = vrot.lane.b32.xlu1 %v1259_v3, %s1056_s20  ;;  %398 = vrot.lane.b32.xlu0 %v1252_v2, %s1056_s20 }
  0x70   : > { %422 = vrot.lane.b32.xlu1 %v1259_v3, %s1059_s8  ;;  %420 = vrot.lane.b32.xlu0 %v1252_v2, %s1059_s8 }
  0x74   : > { %444 = vrot.lane.b32.xlu1 %v1259_v3, %s1060_s15  ;;  %442 = vrot.lane.b32.xlu0 %v1252_v2, %s1060_s15 }
  0x78   : > { %468 = vperm.xlu0 %916, %v465_v6  }
  0xca   : > { %v311_v14 = vpop.permute.xlu1 %310  ;;  %v288_v15 = vpop.permute.xlu0 %287 }
  0xce   : > { %v313_v20 = vpop.permute.xlu1 %312  ;;  %v290_v21 = vpop.permute.xlu0 %289 }
  0xcf   : > { %v315_v22 = vsel %vm314_vm0, %v311_v14, %v313_v20  ;;  %v316_v23 = vsel %vm314_vm0, %v313_v20, %v311_v14  ;;  %v294_v24 = vsel %vm293_vm1, %v288_v15, %v290_v21  ;;  %v295_v25 = vsel %vm293_vm1, %v290_v21, %v288_v15  ;;  %v450_v14 = vld [vmem:[#allocation5 + $0x10] ss:$8 sm:$0x3] }
  0xd0   : > { %v330_v26 = vmul.f32 %v1301_v16, %v316_v23  ;;  %v308_v27 = vmul.f32 %v1304_v17, %v295_v25  ;;  %v309_v28 = vmul.f32 %v1307_v18, %v294_v24  ;;  %v331_v29 = vmul.f32 %v1310_v19, %v315_v22 }
  0xd1   : > { %v1389_v23 = vrot.slane %v450_v14, %v1296_v11 }
  0xd2   : > { %v335_v32 = vpop.permute.xlu1 %334  ;;  %v333_v33 = vpop.permute.xlu0 %332  ;;  %v811_v34 = vpack.c.bf16 %v331_v29, %v309_v28  ;;  %v813_v35 = vpack.c.bf16 %v330_v26, %v308_v27  ;;  %v1396_v28 = vrot.slane %v450_v14, %v1294_v10  ;;  %v464_v10 = vld [vmem:[%s1542_s2] sm:$0xff] }
  0xd3   : > { %v337_v41 = vsel %vm336_vm2, %v333_v33, %v335_v32  ;;  %v338_v42 = vsel %vm336_vm2, %v335_v32, %v333_v33 }
  0xd4   : > { %812 = vmatprep.subr.bf16.mxu0 %v811_v34  ;;  %v352_v49 = vmul.f32 %v1327_v36, %v338_v42  ;;  %v353_v50 = vmul.f32 %v1330_v37, %v337_v41 }
  0xd5   : > { %814 = vmatpush1.bf16.msra.mxu0 %v813_v35 }
  0xd6   : > { %v357_v43 = vpop.permute.xlu1 %356  ;;  %v355_v44 = vpop.permute.xlu0 %354 }
  0xd7   : > { %v359_v45 = vsel %vm358_vm3, %v355_v44, %v357_v43  ;;  %v360_v46 = vsel %vm358_vm3, %v357_v43, %v355_v44 }
  0xd8   : > { %v374_v51 = vmul.f32 %v1333_v38, %v360_v46  ;;  %v375_v52 = vmul.f32 %v1336_v39, %v359_v45 }
  0xda   : > { %v379_v53 = vpop.permute.xlu1 %378  ;;  %v377_v54 = vpop.permute.xlu0 %376  ;;  %v815_v55 = vpack.c.bf16 %v375_v52, %v353_v50  ;;  %v817_v56 = vpack.c.bf16 %v374_v51, %v352_v49  ;;  %v613_v49 = vld [vmem:[%s1545_s5] sm:$0xff] }
  0xdb   : > { %v381_v57 = vsel %vm380_vm4, %v377_v54, %v379_v53  ;;  %v382_v58 = vsel %vm380_vm4, %v379_v53, %v377_v54 }
  0xdc   : > { %v396_v59 = vmul.f32 %v1348_v47, %v381_v57  ;;  %v397_v60 = vmul.f32 %v1351_v48, %v382_v58  ;;  %816 = vmatprep.subr.bf16.mxu0 %v815_v55 }
  0xdd   : > { %818 = vmatpush1.bf16.msra.mxu0 %v817_v56 }
  0xde   : > { %v401_v63 = vpop.permute.xlu1 %400  ;;  %v399_v4 = vpop.permute.xlu0 %398  ;;  %v819_v5 = vpack.c.bf16 %v397_v60, %v1259_v3  ;;  %v821_v6 = vpack.c.bf16 %v396_v59, %v1252_v2 }
  0xdf   : > { %v403_v3 = vsel %vm402_vm5, %v399_v4, %v401_v63  ;;  %v404_v2 = vsel %vm402_vm5, %v401_v63, %v399_v4 }
  0xe0   : > { %820 = vmatprep.subr.bf16.mxu0 %v819_v5  ;;  %v418_v24 = vmul.f32 %v1367_v7, %v403_v3  ;;  %v419_v25 = vmul.f32 %v1370_v8, %v404_v2 }
  0xe1   : > { %822 = vmatpush1.bf16.msra.mxu0 %v821_v6 }
  0xe2   : > { %v423_v15 = vpop.permute.xlu1 %422  ;;  %v421_v20 = vpop.permute.xlu0 %420 }
  0xe3   : > { %v425_v21 = vsel %vm424_vm6, %v421_v20, %v423_v15  ;;  %v426_v22 = vsel %vm424_vm6, %v423_v15, %v421_v20 }
  0xe4   : > { %v440_v26 = vmul.f32 %v1374_v12, %v425_v21  ;;  %v441_v27 = vmul.f32 %v1377_v13, %v426_v22 }
  0xe6   : > { %v445_v29 = vpop.permute.xlu1 %444  ;;  %v823_v30 = vpack.c.bf16 %v441_v27, %v419_v25  ;;  %v443_v31 = vpop.permute.xlu0 %442  ;;  %v825_v32 = vpack.c.bf16 %v440_v26, %v418_v24 }
  0xe7   : > { %v447_v33 = vsel %vm446_vm7, %v443_v31, %v445_v29  ;;  %v448_v11 = vsel %vm446_vm7, %v445_v29, %v443_v31 }
  0xe8   : > { %824 = vmatprep.subr.bf16.mxu0 %v823_v30  ;;  %v463_v34 = vmul.f32 %v1389_v23, %v448_v11  ;;  %v462_v35 = vmul.f32 %v1396_v28, %v447_v33 }
  0xe9   : > { %826 = vmatpush1.bf16.msra.mxu0 %v825_v32 }
  0xea   : > { %491 = vmatprep.subr.mxu0 %v463_v34 }
  0xed   : > { %492 = vmatpush1.msra.mxu0 %v462_v35 }
  0xee   : > { %802 = vmatmul.mubr.msk.f32.vlgmr.msra.gmra.mrb[0].mxu0 %vm471_vm8, %v464_v10 }
  0xf7   : > { %v469_v40 = vpop.permute.xlu0 %468 }
 0x1c1   : > { %v541_v41 = vpop.f32.mrb[0].mxu0 }
 0x1c2   : > { %v542_v42 = vadd.f32 %v541_v41, %v469_v40  ;;  %v543_v43 = vpop.f32.mrb[1].mxu0 }
 0x1c3   : > { %v544_v45 = vadd.f32 %v543_v43, %v469_v40 }
 0x1c4   : > { %v1407_v44 = vmax.f32 %v542_v42, 0.0 }
 0x1c5   : > { %v547_v46 = vmax.f32 %v544_v45, 0.0 }
 0x1c6   : > { %556 = vrot.lane.b32.xlu0 %v1407_v44, %s1051_s29  ;;  %548 = vrot.lane.b32.xlu1 %v1407_v44, %s1052_s19 }
 0x1ca   : > { %564 = vrot.lane.b32.xlu0 %v1407_v44, %s1053_s27  ;;  %550 = vrot.lane.b32.xlu1 %v547_v46, %s1052_s19 }
 0x1ce   : > { %572 = vrot.lane.b32.xlu0 %v1407_v44, %s1054_s10  ;;  %558 = vrot.lane.b32.xlu1 %v547_v46, %s1051_s29 }
 0x1d2   : > { %580 = vrot.lane.b32.xlu0 %v1407_v44, %s1055_s11  ;;  %566 = vrot.lane.b32.xlu1 %v547_v46, %s1053_s27 }
 0x1d6   : > { %588 = vrot.lane.b32.xlu0 %v1407_v44, %s1056_s20  ;;  %574 = vrot.lane.b32.xlu1 %v547_v46, %s1054_s10  ;;  %s810_s10 = sshll.u32 %s1118_s25, 8  ;;  %s697_s25 = scalar_lea.sflag [#allocation4], %s1233_s26 }
 0x1d7   : > { %s1496_s18 = scalar_lea.hbm %s1546_s6, %s810_s10 }
 0x1da   : > { %596 = vrot.lane.b32.xlu0 %v1407_v44, %s1059_s8  ;;  %582 = vrot.lane.b32.xlu1 %v547_v46, %s1055_s11  ;;  %s282_s11 = scalar_lea.vmem [#allocation7], %s799_s12 }
 0x1de   : > { %604 = vrot.lane.b32.xlu0 %v1407_v44, %s1060_s15  ;;  %590 = vrot.lane.b32.xlu1 %v547_v46, %s1056_s20  ;;  %s711_s20 = sshll.u32 %s282_s11, 4  ;;  %s1498_s20 = int_to_ptr.vmem [resolvable:$true] %s711_s20 }
 0x1df   : > { %s975_s12 = scalar_lea.vmem %s1498_s20, 256  ;;  %p982_p10 = scmp.lt.s32.totalorder %s1498_s20, %s980_s30 }
 0x1e0   : > { %p976_p4 = scmp.ne.s32.totalorder %s1498_s20, %s975_s12  ;;  %p983_p13 = scmp.lt.s32.totalorder %s981_s16, %s975_s12 }
 0x1e2   : > { %616 = vperm.xlu0 %916, %v613_v49   ;;  %598 = vrot.lane.b32.xlu1 %v547_v46, %s1059_s8  ;;  %v612_v49 = vld [vmem:[%s1544_s4] sm:$0xff]  ;;  %p977_p6 = pnand %p976_p4, %p1188_p12  ;;  %p984_p3 = por %p983_p13, %p982_p10 }
 0x1e4   : > { %p978_p8 = pneg %p977_p6 }
 0x1e6   : > { %606 = vrot.lane.b32.xlu1 %v547_v46, %s1060_s15  ;;  %p985_p7 = pnand %p984_p3, %p978_p8 }
 0x238   : > { %v557_v50 = vpop.permute.xlu0 %556  ;;  %v549_v51 = vpop.permute.xlu1 %548 }
 0x23c   : > { %v565_v52 = vpop.permute.xlu0 %564  ;;  %v551_v53 = vpop.permute.xlu1 %550 }
 0x23d   : > { %v552_v54 = vsel %vm293_vm1, %v549_v51, %v551_v53  ;;  %v553_v55 = vsel %vm293_vm1, %v551_v53, %v549_v51 }
 0x23e   : > { %v554_v60 = vmul.f32 %v553_v55, %v1304_v17  ;;  %v555_v62 = vmul.f32 %v552_v54, %v1307_v18 }
 0x240   : > { %v573_v56 = vpop.permute.xlu0 %572  ;;  %v559_v57 = vpop.permute.xlu1 %558 }
 0x241   : > { %v560_v58 = vsel %vm314_vm0, %v557_v50, %v559_v57  ;;  %v561_v59 = vsel %vm314_vm0, %v559_v57, %v557_v50 }
 0x242   : > { %v562_v61 = vmul.f32 %v561_v59, %v1301_v16  ;;  %v563_v63 = vmul.f32 %v560_v58, %v1310_v19 }
 0x244   : > { %v567_v4 = vpop.permute.xlu1 %566  ;;  %v827_v5 = vpack.c.bf16 %v563_v63, %v555_v62  ;;  %v829_v6 = vpack.c.bf16 %v562_v61, %v554_v60  ;;  %v581_v14 = vpop.permute.xlu0 %580 }
 0x245   : > { %v568_v3 = vsel %vm336_vm2, %v565_v52, %v567_v4  ;;  %v569_v2 = vsel %vm336_vm2, %v567_v4, %v565_v52 }
 0x246   : > { %828 = vmatprep.subr.bf16.mxu1 %v827_v5  ;;  %v570_v18 = vmul.f32 %v569_v2, %v1327_v36  ;;  %v571_v19 = vmul.f32 %v568_v3, %v1330_v37 }
 0x247   : > { %830 = vmatpush1.bf16.msra.mxu1 %v829_v6 }
 0x248   : > { %v575_v15 = vpop.permute.xlu1 %574  ;;  %v589_v22 = vpop.permute.xlu0 %588 }
 0x249   : > { %v576_v16 = vsel %vm358_vm3, %v573_v56, %v575_v15  ;;  %v577_v17 = vsel %vm358_vm3, %v575_v15, %v573_v56 }
 0x24a   : > { %v578_v20 = vmul.f32 %v577_v17, %v1333_v38  ;;  %v579_v21 = vmul.f32 %v576_v16, %v1336_v39 }
 0x24c   : > { %v583_v24 = vpop.permute.xlu1 %582  ;;  %v831_v25 = vpack.c.bf16 %v579_v21, %v571_v19  ;;  %v833_v26 = vpack.c.bf16 %v578_v20, %v570_v18  ;;  %v597_v31 = vpop.permute.xlu0 %596 }
 0x24d   : > { %v584_v27 = vsel %vm380_vm4, %v581_v14, %v583_v24  ;;  %v585_v29 = vsel %vm380_vm4, %v583_v24, %v581_v14 }
 0x24e   : > { %v586_v30 = vmul.f32 %v584_v27, %v1348_v47  ;;  %v587_v36 = vmul.f32 %v585_v29, %v1351_v48  ;;  %832 = vmatprep.subr.bf16.mxu1 %v831_v25 }
 0x24f   : > { %834 = vmatpush1.bf16.msra.mxu1 %v833_v26 }
 0x250   : > { %v591_v37 = vpop.permute.xlu1 %590  ;;  %v835_v38 = vpack.c.bf16 %v587_v36, %v547_v46  ;;  %v837_v39 = vpack.c.bf16 %v586_v30, %v1407_v44  ;;  %v605_v41 = vpop.permute.xlu0 %604 }
 0x251   : > { %v592_v32 = vsel %vm402_vm5, %v589_v22, %v591_v37  ;;  %v593_v33 = vsel %vm402_vm5, %v591_v37, %v589_v22 }
 0x252   : > { %836 = vmatprep.subr.bf16.mxu1 %v835_v38  ;;  %v594_v34 = vmul.f32 %v592_v32, %v1367_v7  ;;  %v595_v35 = vmul.f32 %v593_v33, %v1370_v8 }
 0x253   : > { %838 = vmatpush1.bf16.msra.mxu1 %v837_v39 }
 0x254   : > { %v599_v11 = vpop.permute.xlu1 %598 }
 0x255   : > { %v600_v47 = vsel %vm424_vm6, %v597_v31, %v599_v11  ;;  %v601_v48 = vsel %vm424_vm6, %v599_v11, %v597_v31 }
 0x256   : > { %v602_v10 = vmul.f32 %v600_v47, %v1374_v12  ;;  %v603_v40 = vmul.f32 %v601_v48, %v1377_v13 }
 0x258   : > { %v607_v42 = vpop.permute.xlu1 %606  ;;  %v839_v43 = vpack.c.bf16 %v603_v40, %v595_v35  ;;  %v841_v44 = vpack.c.bf16 %v602_v10, %v594_v34 }
 0x259   : > { %v608_v45 = vsel %vm446_vm7, %v605_v41, %v607_v42  ;;  %v609_v46 = vsel %vm446_vm7, %v607_v42, %v605_v41 }
 0x25a   : > { %v610_v7 = vmul.f32 %v608_v45, %v1396_v28  ;;  %v611_v8 = vmul.f32 %v609_v46, %v1389_v23  ;;  %840 = vmatprep.subr.bf16.mxu1 %v839_v43 }
 0x25b   : > { %842 = vmatpush1.bf16.msra.mxu1 %v841_v44 }
 0x25c   : > { %v843_v12 = vpack.c.bf16 %v1249_v1, %v611_v8  ;;  %v845_v13 = vpack.c.bf16 %v1247_v0, %v610_v7 }
 0x25e   : > { %844 = vmatprep.subr.bf16.mxu1 %v843_v12 }
 0x25f   : > { %846 = vmatpush1.bf16.msra.mxu1 %v845_v13 }
 0x261   : > { %v617_v9 = vpop.permute.xlu0 %616 }
 0x262   : > { %803 = vmatmul.mubr.msk.f32.vlgmr.msra.gmra.mrb[0].mxu1 %vm619_vm9, %v612_v49 }
 0x335   : > { %v689_v23 = vpop.f32.mrb[0].mxu1 }
 0x336   : > { %v690_v28 = vadd.f32 %v689_v23, %v617_v9  ;;  %v691_v1 = vpop.f32.mrb[1].mxu1 }
 0x337   : > { %v692_v50 = vadd.f32 %v691_v1, %v617_v9 }
 0x338   : > { %694 = vst [vmem:[%s282_s11] sm:$0xff] %v690_v28 }
 0x339   : > { %695 = vst [vmem:[%s282_s11 + $0x8] sm:$0xff] %v692_v50 }
 0x33a   : > { %988 = shalt.err (!%p985_p7)
}
 0x33b   : > { %s989_s26 = scalar_lea.hbm %s1496_s18, 256  ;;  %s993_s19 = scalar_lea.hbm %s1546_s6, 512 }
 0x33c   : > { %p990_p9 = scmp.ne.s32.totalorder %s1496_s18, %s989_s26  ;;  %p994_p0 = scmp.lt.u32.totalorder %s1496_s18, %s1546_s6 }
 0x33d   : > { %p995_p11 = scmp.lt.u32.totalorder %s993_s19, %s989_s26  ;;  %p997_p4 = scmp.lt.u32.totalorder %s989_s26, %s1496_s18 }
 0x33e   : > { %p991_p2 = pnand %p990_p9, %p1188_p12 }
 0x33f   : > { %p996_p1 = por %p995_p11, %p994_p0 }
 0x340   : > { %p992_p5 = pneg %p991_p2 }
 0x341   : > { %p998_p6 = por %p997_p4, %p996_p1 }
 0x343   : > { %p999_p8 = pnand %p998_p6, %p992_p5 }
 0x345   : > { %1002 = shalt.err (!%p999_p8)
}
 0x346   : > { %853 = dma.vmem_to_hbm [thread:$0]  (%p1188_p12), %s1498_s20, 256, %s1496_s18, %s697_s25  }
 0x347 PF: > { %s723_s11 = sand.u32 1, %s1033_s21   ;;  %p1561_p10 = scmp.ne.s32.totalorder %s1551_s28, 0 }
 0x348   : > { %p1562_p13 = scmp.ge.s32.totalorder %s1045_s24, 2  ;;  %s724_s8 = scalar_lea.sflag [#allocation4], %s723_s11 }
 0x34a   : > { %p864_p3 = pnand %p1562_p13, %p1561_p10 }
 0x34c   : > { %1028 = dma.done.wait (!%p864_p3), %s724_s8, 256  }
 0x34d   : > { %1030 = vsyncadd (!%p864_p3), %s724_s8, 4294967040  ;;  %p20_p7 = scmp.ge.s32.totalorder %s1153_s9, 4   ;;  %s1563_s21 = smov %s1037_s22 }
 0x34e   : > { %s1564_s22 = smov %s1041_s23  ;;  %s1565_s23 = smov %s1184_s13 }
 0x34f   : > { %s1566_s24 = smov %s1153_s9  ;;  %22 = sbr.rel (!%p20_p7) target bundleno = 6 (0x6), region = 100 }
 0x356   :  { %729 = vsyncpa [#allocation3], 1 }
 0x357   :  { %731 = vsyncpa [#allocation3 + $0x1], 1 }
 0x358   :  { %732 = vsyncpa [#allocation6], 1 }
 0x359   :  { %733 = vsyncpa [#allocation4], 1 }
 0x35a   :  { %735 = vsyncpa [#allocation4 + $0x1], 1 }

</bundles_post_ra>
